<compile_context>
chip_gen: v7x
topology: tpu7x:2x2x1
jax: 0.10.0
libtpu: 0.0.40
codegen_flags: <defaults>
</compile_context>

<pallas_src>
import functools
import math

import jax
import jax.numpy as jnp
from jax import lax
from jax.experimental import pallas as pl
from jax.experimental.pallas import tpu as pltpu


def _freq_amp(r, f0, mode):
    """Mirror of the `config.args.freq_amp` branches in the PyTorch module."""
    if mode == "2scales":
        return jnp.maximum(0.0, 1.0 - jnp.abs(1.0 - jnp.log2(f0 * r)))
    if mode == "trans_scales":
        return jnp.minimum(1.0, jnp.maximum(0.0, -jnp.log2(f0 * r)))
    if mode == "ind":
        return ((f0 * r >= 1.0) & (f0 * r < 2.0)).astype(r.dtype)
    raise ValueError(f"unknown freq_amp mode: {mode}")


def _round_up(x, m):
    return (x + m - 1) // m * m


def _periodicity_kernel(phase_ref, fy2_ref, fx2_ref, weff_ref, bias_ref,
                        coord_ref, out_ref, *, lane_chunk):
    """One (batch-tile, pixel-tile) grid step.

    phase_ref : (1, 1)              f32 scalar in SMEM
    fy2_ref   : (tile_b, n_freq, 1) f32, 2*pi*fy
    fx2_ref   : (tile_b, n_freq, 1) f32, 2*pi*fx
    weff_ref  : (tile_b, n_out, n_freq) bf16/f32, conv_w * freq_amp * modulation
    bias_ref  : (n_out, 1)          f32
    coord_ref : (2, tile_p)         f32, row0 = centered w coord, row1 = centered h coord
    out_ref   : (tile_b, n_out, tile_p)   pixels on the 128-lane axis
    """
    tile_b = out_ref.shape[0]
    tile_p = out_ref.shape[-1]
    n_chunks = tile_p // lane_chunk

    ph = phase_ref[0, 0]
    bias = bias_ref[...]                                   # (n_out, 1)

    def chunk(c, carry):
        start = pl.multiple_of(c * lane_chunk, lane_chunk)
        wc = coord_ref[0:1, pl.ds(start, lane_chunk)]      # (1, lane_chunk)
        hc = coord_ref[1:2, pl.ds(start, lane_chunk)]      # (1, lane_chunk)
        for b in range(tile_b):                            # static, small
            # arg[k, p] = 2*pi*(fy[k]*wc[p] + fx[k]*hc[p]) + phase   (VPU broadcasts)
            arg = fy2_ref[b] * wc + fx2_ref[b] * hc + ph   # (n_freq, lane_chunk) f32
            s = jnp.sin(arg).astype(weff_ref.dtype)        # EUP, then bf16 for MXU
            acc = jnp.dot(weff_ref[b], s,
                          preferred_element_type=jnp.float32)   # (n_out, lane_chunk)
            out_ref[b, :, pl.ds(start, lane_chunk)] = (acc + bias).astype(out_ref.dtype)
        return carry

    lax.fori_loop(0, n_chunks, chunk, 0, unroll=True)


def periodicity_forward(x, w_mod, fx, fy, phase, f0,
                        to_style_w, to_style_b, conv_w, conv_b,
                        *, freq_amp_mode="2scales", max_tile_p=8192,
                        lane_chunk=2048, tile_b=None,
                        out_dtype=jnp.float32, matmul_dtype=jnp.bfloat16):
    """PeriodicityUnit.forward (w_map=None branch) as a Pallas TPU kernel.

    x          : (B, C, H, W)   -- only its spatial shape is used (as in PyTorch)
    w_mod      : (B, nc_w)
    fx, fy     : (B, n_freq)
    phase      : scalar
    to_style_w : (n_freq, nc_w), to_style_b : (n_freq,)    [Linear nc_w -> n_freq]
    conv_w     : (n_out, n_freq), conv_b : (n_out,)        [1x1 Conv n_freq -> n_out]
    returns    : (out (B, n_out, H, W), modulation.abs().mean())
    """
    B, _, H, W = x.shape
    HW = H * W
    n_freq = fx.shape[1]
    n_out = conv_w.shape[0]

    # ---- grid-invariant prep, hoisted out of the kernel --------------------
    modulation = (w_mod.astype(jnp.float32) @ to_style_w.T.astype(jnp.float32)
                  + to_style_b.astype(jnp.float32))                        # (B, n_freq)
    r = jnp.sqrt(fx * fx + fy * fy).astype(jnp.float32)
    freq_amp = _freq_amp(r, f0, freq_amp_mode)                             # (B, n_freq)
    # Fold freq_amp * modulation into the 1x1-conv weight -> per-batch W_eff.
    w_eff = (conv_w[None, :, :].astype(jnp.float32)
             * (freq_amp * modulation)[:, None, :]).astype(matmul_dtype)   # (B, n_out, n_freq)
    two_pi = 2.0 * math.pi
    fy2 = (two_pi * fy).astype(jnp.float32)[..., None]                     # (B, n_freq, 1)
    fx2 = (two_pi * fx).astype(jnp.float32)[..., None]                     # (B, n_freq, 1)
    bias_col = conv_b.reshape(n_out, 1).astype(jnp.float32)
    phase_arr = jnp.reshape(jnp.asarray(phase, jnp.float32), (1, 1))

    # ---- pixel tiling: lane axis = pixels, padded to a 128-multiple --------
    tile_p = min(_round_up(max_tile_p, 128), _round_up(HW, 128))
    lane_chunk = min(lane_chunk, tile_p)
    if tile_p % lane_chunk != 0:
        lane_chunk = 128                       # 128 always divides tile_p
    HW_pad = _round_up(HW, tile_p)
    n_ptiles = HW_pad // tile_p

    # Centered coordinate grid (2, HW_pad): row0 = w - (W-1)/2, row1 = h - (H-1)/2.
    wc_row = jnp.arange(W, dtype=jnp.float32)[None, :] - (W - 1) / 2.0
    hc_col = jnp.arange(H, dtype=jnp.float32)[:, None] - (H - 1) / 2.0
    coord = jnp.stack([jnp.broadcast_to(wc_row, (H, W)).reshape(-1),
                       jnp.broadcast_to(hc_col, (H, W)).reshape(-1)], axis=0)
    coord = jnp.pad(coord, ((0, 0), (0, HW_pad - HW)))                     # (2, HW_pad)

    # Fold small batches into one grid step (amortize per-step overhead).
    if tile_b is None:
        tile_b = B if B <= 8 else 1
    assert B % tile_b == 0, "tile_b must divide B"

    out_dsize = jnp.dtype(out_dtype).itemsize
    cost = pl.CostEstimate(
        flops=int(B * HW_pad * n_freq * (4 + 2 * n_out)),
        transcendentals=int(B * HW_pad * n_freq),
        bytes_accessed=int(B * n_out * HW_pad * out_dsize
                           + (B // tile_b) * 2 * HW_pad * 4
                           + B * n_freq * (n_out + 2) * 4),
    )

    kernel = functools.partial(_periodicity_kernel, lane_chunk=lane_chunk)
    out_flat = pl.pallas_call(
        kernel,
        out_shape=jax.ShapeDtypeStruct((B, n_out, HW_pad), out_dtype),
        grid_spec=pltpu.PrefetchScalarGridSpec(
            num_scalar_prefetch=0,
            grid=(B // tile_b, n_ptiles),
            in_specs=[
                pl.BlockSpec(memory_space=pltpu.MemorySpace.SMEM),          # phase (1,1)
                pl.BlockSpec((tile_b, n_freq, 1), lambda b, j: (b, 0, 0)),  # 2*pi*fy
                pl.BlockSpec((tile_b, n_freq, 1), lambda b, j: (b, 0, 0)),  # 2*pi*fx
                pl.BlockSpec((tile_b, n_out, n_freq), lambda b, j: (b, 0, 0)),  # W_eff
                pl.BlockSpec((n_out, 1), lambda b, j: (0, 0)),              # bias
                pl.BlockSpec((2, tile_p), lambda b, j: (0, j)),             # coord grid
            ],
            out_specs=pl.BlockSpec((tile_b, n_out, tile_p), lambda b, j: (b, 0, j)),
        ),
        compiler_params=pltpu.CompilerParams(
            # Both axes are independent (no reduction) -> v7x can shard them
            # across its two TensorCores.
            dimension_semantics=("parallel", "parallel"),
        ),
        cost_estimate=cost,
    )(phase_arr, fy2, fx2, w_eff, bias_col, coord)

    out = out_flat[:, :, :HW].reshape(B, n_out, H, W)
    return out, jnp.mean(jnp.abs(modulation))


def periodicity_reference(x, w_mod, fx, fy, phase, f0,
                          to_style_w, to_style_b, conv_w, conv_b,
                          freq_amp_mode="2scales"):
    """Pure-JAX mirror of the PyTorch forward (w_map=None branch)."""
    B, _, H, W = x.shape
    n_out = conv_w.shape[0]
    wc = jnp.broadcast_to(jnp.arange(W, dtype=jnp.float32)[None, :], (H, W)) - (W - 1) / 2.0
    hc = jnp.broadcast_to(jnp.arange(H, dtype=jnp.float32)[:, None], (H, W)) - (H - 1) / 2.0
    grid = jnp.stack([wc.reshape(-1), hc.reshape(-1)], axis=0)             # (2, HW)
    freq = jnp.stack([fy, fx], axis=2)                                     # (B, n_freq, 2)
    r = jnp.sqrt(fx * fx + fy * fy)
    freq_amp = _freq_amp(r, f0, freq_amp_mode)
    arg = jnp.einsum("bkt,tp->bkp", 2.0 * math.pi * freq, grid,
                     precision=jax.lax.Precision.HIGHEST) + phase
    sines = freq_amp[..., None] * jnp.sin(arg)
    modulation = w_mod @ to_style_w.T + to_style_b                         # (B, n_freq)
    sines = sines * modulation[..., None]
    out = jnp.einsum("ok,bkp->bop", conv_w, sines,
                     precision=jax.lax.Precision.HIGHEST) + conv_b[None, :, None]
    return out.reshape(B, n_out, H, W), jnp.mean(jnp.abs(modulation))


if __name__ == "__main__":
    # Small shapes consistent with the module: B=2, nc_in=4, H=W=16, n_freq=8,
    # nc_w=32, out_channels=8.
    B, C, H, W = 2, 4, 16, 16
    n_freq, nc_w, n_out = 8, 32, 8
    f0 = 8.0

    key = jax.random.PRNGKey(0)
    kx, kwm, kfx, kfy, kp, kw1, kb1, kw2, kb2 = jax.random.split(key, 9)
    x = jax.random.normal(kx, (B, C, H, W), dtype=jnp.float32)   # values unused (shape only)
    w_mod = jax.random.normal(kwm, (B, nc_w), dtype=jnp.float32)
    fx = jax.random.uniform(kfx, (B, n_freq), jnp.float32, 0.05, 0.2)
    fy = jax.random.uniform(kfy, (B, n_freq), jnp.float32, 0.05, 0.2)
    phase = 2.0 * math.pi * jax.random.uniform(kp, (), jnp.float32)

    to_style_w = jax.random.normal(kw1, (n_freq, nc_w), jnp.float32) / math.sqrt(nc_w)
    to_style_b = 0.1 * jax.random.normal(kb1, (n_freq,), jnp.float32)
    conv_w = jax.random.normal(kw2, (n_out, n_freq), jnp.float32) / math.sqrt(n_freq)
    conv_b = 0.1 * jax.random.normal(kb2, (n_out,), jnp.float32)

    out, mod_mean = periodicity_forward(
        x, w_mod, fx, fy, phase, f0, to_style_w, to_style_b, conv_w, conv_b)
    out = jax.block_until_ready(out)
    mod_mean = jax.block_until_ready(mod_mean)

    ref_out, ref_mod = periodicity_reference(
        x, w_mod, fx, fy, phase, f0, to_style_w, to_style_b, conv_w, conv_b)

    assert out.shape == (B, n_out, H, W)
    # bf16 MXU operands (per perf review) -> compare at a bf16-appropriate tolerance.
    assert jnp.allclose(out, ref_out, rtol=2e-2, atol=2e-2), "mismatch vs reference (out)"
    assert jnp.allclose(mod_mean, ref_mod, rtol=1e-5, atol=1e-5), "mismatch vs reference (mod)"

    print("KERNEL_OK")
</pallas_src>

<mosaic_0001>
module attributes {stable_mosaic.version = 11 : i64} {
  func.func @_periodicity_kernel(%arg0: i32, %arg1: i32, %arg2: memref<1x1xf32, #tpu.memory_space<smem>>, %arg3: memref<2x8x1xf32, #tpu.memory_space<vmem>>, %arg4: memref<2x8x1xf32, #tpu.memory_space<vmem>>, %arg5: memref<2x8x8xbf16, #tpu.memory_space<vmem>>, %arg6: memref<8x1xf32, #tpu.memory_space<vmem>>, %arg7: memref<2x256xf32, #tpu.memory_space<vmem>>, %arg8: memref<2x8x256xf32, #tpu.memory_space<vmem>>) attributes {dimension_semantics = [#tpu.dimension_semantics<parallel>, #tpu.dimension_semantics<parallel>], iteration_bounds = array<i64: 1, 1>, scalar_prefetch = 0 : i64, scratch_operands = 0 : i64, tpu.core_type = #tpu.core_type<tc>, window_params = [{transform_indices = @transform_0, window_bounds = array<i64: 1, 1>}, {transform_indices = @transform_1, window_bounds = array<i64: 2, 8, 1>}, {transform_indices = @transform_2, window_bounds = array<i64: 2, 8, 1>}, {transform_indices = @transform_3, window_bounds = array<i64: 2, 8, 8>}, {pipeline_mode = #tpu.pipeline_mode<synchronous>, transform_indices = @transform_4, window_bounds = array<i64: 8, 1>}, {transform_indices = @transform_5, window_bounds = array<i64: 2, 256>}, {transform_indices = @transform_6, window_bounds = array<i64: 2, 8, 256>}]} {
    %c0 = arith.constant 0 : index
    %c0_0 = arith.constant 0 : index
    %0 = memref.load %arg2[%c0, %c0_0] : memref<1x1xf32, #tpu.memory_space<smem>>
    %c0_1 = arith.constant 0 : index
    %c0_2 = arith.constant 0 : index
    %1 = vector.load %arg6[%c0_1, %c0_2] : memref<8x1xf32, #tpu.memory_space<vmem>>, vector<8x1xf32>
    %c0_i32 = arith.constant 0 : i32
    %c256_i32 = arith.constant 256 : i32
    %2 = arith.muli %c0_i32, %c256_i32 : i32
    %3 = tpu.assume_multiple %2, 256 : i32
    %c0_3 = arith.constant 0 : index
    %4 = arith.index_cast %3 : i32 to index
    %5 = vector.load %arg7[%c0_3, %4] : memref<2x256xf32, #tpu.memory_space<vmem>>, vector<1x256xf32>
    %c1 = arith.constant 1 : index
    %6 = arith.index_cast %3 : i32 to index
    %7 = vector.load %arg7[%c1, %6] : memref<2x256xf32, #tpu.memory_space<vmem>>, vector<1x256xf32>
    %c0_4 = arith.constant 0 : index
    %c0_5 = arith.constant 0 : index
    %c0_6 = arith.constant 0 : index
    %8 = vector.load %arg3[%c0_4, %c0_5, %c0_6] : memref<2x8x1xf32, #tpu.memory_space<vmem>>, vector<1x8x1xf32>
    %9 = vector.shape_cast %8 : vector<1x8x1xf32> to vector<8x1xf32>
    %10 = vector.broadcast %9 : vector<8x1xf32> to vector<8x256xf32>
    %11 = vector.broadcast %5 : vector<1x256xf32> to vector<8x256xf32>
    %12 = arith.mulf %10, %11 : vector<8x256xf32>
    %c0_7 = arith.constant 0 : index
    %c0_8 = arith.constant 0 : index
    %c0_9 = arith.constant 0 : index
    %13 = vector.load %arg4[%c0_7, %c0_8, %c0_9] : memref<2x8x1xf32, #tpu.memory_space<vmem>>, vector<1x8x1xf32>
    %14 = vector.shape_cast %13 : vector<1x8x1xf32> to vector<8x1xf32>
    %15 = vector.broadcast %14 : vector<8x1xf32> to vector<8x256xf32>
    %16 = vector.broadcast %7 : vector<1x256xf32> to vector<8x256xf32>
    %17 = arith.mulf %15, %16 : vector<8x256xf32>
    %18 = arith.addf %12, %17 : vector<8x256xf32>
    %19 = vector.broadcast %0 : f32 to vector<8x256xf32>
    %20 = arith.addf %18, %19 : vector<8x256xf32>
    %21 = math.sin %20 : vector<8x256xf32>
    %22 = arith.truncf %21 : vector<8x256xf32> to vector<8x256xbf16>
    %c0_10 = arith.constant 0 : index
    %c0_11 = arith.constant 0 : index
    %c0_12 = arith.constant 0 : index
    %23 = vector.load %arg5[%c0_10, %c0_11, %c0_12] : memref<2x8x8xbf16, #tpu.memory_space<vmem>>, vector<1x8x8xbf16>
    %24 = vector.shape_cast %23 : vector<1x8x8xbf16> to vector<8x8xbf16>
    %cst = arith.constant dense<0.000000e+00> : vector<8x256xf32>
    %25 = tpu.matmul %24, %22, %cst {dimension_numbers = #tpu.dot_dimension_numbers<[1], [0], [0], [1], [0, 0, 1, 1], [], []>} : vector<8x8xbf16>, vector<8x256xbf16>, vector<8x256xf32> -> vector<8x256xf32>
    %26 = vector.broadcast %1 : vector<8x1xf32> to vector<8x256xf32>
    %27 = arith.addf %25, %26 : vector<8x256xf32>
    %c0_13 = arith.constant 0 : index
    %c0_14 = arith.constant 0 : index
    %28 = arith.index_cast %3 : i32 to index
    %29 = vector.load %arg8[%c0_13, %c0_14, %28] : memref<2x8x256xf32, #tpu.memory_space<vmem>>, vector<1x8x256xf32>
    %30 = vector.shape_cast %29 : vector<1x8x256xf32> to vector<8x256xf32>
    %31 = vector.shape_cast %27 : vector<8x256xf32> to vector<1x8x256xf32>
    tpu.vector_store %arg8[%c0_13, %c0_14, %28], %31 {strides = array<i32>} : memref<2x8x256xf32, #tpu.memory_space<vmem>>, vector<1x8x256xf32>,
    %c1_15 = arith.constant 1 : index
    %c0_16 = arith.constant 0 : index
    %c0_17 = arith.constant 0 : index
    %32 = vector.load %arg3[%c1_15, %c0_16, %c0_17] : memref<2x8x1xf32, #tpu.memory_space<vmem>>, vector<1x8x1xf32>
    %33 = vector.shape_cast %32 : vector<1x8x1xf32> to vector<8x1xf32>
    %34 = vector.broadcast %33 : vector<8x1xf32> to vector<8x256xf32>
    %35 = vector.broadcast %5 : vector<1x256xf32> to vector<8x256xf32>
    %36 = arith.mulf %34, %35 : vector<8x256xf32>
    %c1_18 = arith.constant 1 : index
    %c0_19 = arith.constant 0 : index
    %c0_20 = arith.constant 0 : index
    %37 = vector.load %arg4[%c1_18, %c0_19, %c0_20] : memref<2x8x1xf32, #tpu.memory_space<vmem>>, vector<1x8x1xf32>
    %38 = vector.shape_cast %37 : vector<1x8x1xf32> to vector<8x1xf32>
    %39 = vector.broadcast %38 : vector<8x1xf32> to vector<8x256xf32>
    %40 = vector.broadcast %7 : vector<1x256xf32> to vector<8x256xf32>
    %41 = arith.mulf %39, %40 : vector<8x256xf32>
    %42 = arith.addf %36, %41 : vector<8x256xf32>
    %43 = vector.broadcast %0 : f32 to vector<8x256xf32>
    %44 = arith.addf %42, %43 : vector<8x256xf32>
    %45 = math.sin %44 : vector<8x256xf32>
    %46 = arith.truncf %45 : vector<8x256xf32> to vector<8x256xbf16>
    %c1_21 = arith.constant 1 : index
    %c0_22 = arith.constant 0 : index
    %c0_23 = arith.constant 0 : index
    %47 = vector.load %arg5[%c1_21, %c0_22, %c0_23] : memref<2x8x8xbf16, #tpu.memory_space<vmem>>, vector<1x8x8xbf16>
    %48 = vector.shape_cast %47 : vector<1x8x8xbf16> to vector<8x8xbf16>
    %cst_24 = arith.constant dense<0.000000e+00> : vector<8x256xf32>
    %49 = tpu.matmul %48, %46, %cst_24 {dimension_numbers = #tpu.dot_dimension_numbers<[1], [0], [0], [1], [0, 0, 1, 1], [], []>} : vector<8x8xbf16>, vector<8x256xbf16>, vector<8x256xf32> -> vector<8x256xf32>
    %50 = vector.broadcast %1 : vector<8x1xf32> to vector<8x256xf32>
    %51 = arith.addf %49, %50 : vector<8x256xf32>
    %c1_25 = arith.constant 1 : index
    %c0_26 = arith.constant 0 : index
    %52 = arith.index_cast %3 : i32 to index
    %53 = vector.load %arg8[%c1_25, %c0_26, %52] : memref<2x8x256xf32, #tpu.memory_space<vmem>>, vector<1x8x256xf32>
    %54 = vector.shape_cast %53 : vector<1x8x256xf32> to vector<8x256xf32>
    %55 = vector.shape_cast %51 : vector<8x256xf32> to vector<1x8x256xf32>
    tpu.vector_store %arg8[%c1_25, %c0_26, %52], %55 {strides = array<i32>} : memref<2x8x256xf32, #tpu.memory_space<vmem>>, vector<1x8x256xf32>,
    %c1_i32 = arith.constant 1 : i32
    return
  }
  func.func @transform_0(%arg0: i32, %arg1: i32) -> (i32, i32) {
    %c0_i32 = arith.constant 0 : i32
    %c0_i32_0 = arith.constant 0 : i32
    %c0_i32_1 = arith.constant 0 : i32
    return %c0_i32, %c0_i32_0 : i32, i32
  }
  func.func @transform_1(%arg0: i32, %arg1: i32) -> (i32, i32, i32) {
    %c0_i32 = arith.constant 0 : i32
    %c0_i32_0 = arith.constant 0 : i32
    %c0_i32_1 = arith.constant 0 : i32
    return %arg0, %c0_i32, %c0_i32_0 : i32, i32, i32
  }
  func.func @transform_2(%arg0: i32, %arg1: i32) -> (i32, i32, i32) {
    %c0_i32 = arith.constant 0 : i32
    %c0_i32_0 = arith.constant 0 : i32
    %c0_i32_1 = arith.constant 0 : i32
    return %arg0, %c0_i32, %c0_i32_0 : i32, i32, i32
  }
  func.func @transform_3(%arg0: i32, %arg1: i32) -> (i32, i32, i32) {
    %c0_i32 = arith.constant 0 : i32
    %c0_i32_0 = arith.constant 0 : i32
    %c0_i32_1 = arith.constant 0 : i32
    return %arg0, %c0_i32, %c0_i32_0 : i32, i32, i32
  }
  func.func @transform_4(%arg0: i32, %arg1: i32) -> (i32, i32) {
    %c0_i32 = arith.constant 0 : i32
    %c0_i32_0 = arith.constant 0 : i32
    %c0_i32_1 = arith.constant 0 : i32
    return %c0_i32, %c0_i32_0 : i32, i32
  }
  func.func @transform_5(%arg0: i32, %arg1: i32) -> (i32, i32) {
    %c0_i32 = arith.constant 0 : i32
    %c0_i32_0 = arith.constant 0 : i32
    return %c0_i32, %arg1 : i32, i32
  }
  func.func @transform_6(%arg0: i32, %arg1: i32) -> (i32, i32, i32) {
    %c0_i32 = arith.constant 0 : i32
    %c0_i32_0 = arith.constant 0 : i32
    return %arg0, %c0_i32, %arg1 : i32, i32, i32
  }
}

</mosaic_0001>

<bundles_post_ra>
// kernel: tpu_custom_call.1
= control target key start
LH: loop header
LB: loop body
LE: loop exit
PB: predicated region body
PF: predicated region fallthrough
CT: control target
= control target key end

     0   :  { %v742_v2 = vmov 0   ;;  %s1171_s0 = inlined_call_operand.<no memory space> [shape: f32[1,1], index: 0, kind: input, shape index: {}]   ;;  %s1172_s1 = inlined_call_operand.vmem [shape: f32[2,8,1], index: 1, kind: input, shape index: {}]   ;;  %s1173_s2 = inlined_call_operand.vmem [shape: f32[2,8,1], index: 2, kind: input, shape index: {}]   ;;  %s1174_s3 = inlined_call_operand.vmem [shape: bf16[2,8,8], index: 3, kind: input, shape index: {}]   ;;  %s1175_s4 = inlined_call_operand.vmem [shape: f32[8,1], index: 4, kind: input, shape index: {}]   ;;  %s1176_s5 = inlined_call_operand.vmem [shape: f32[2,256], index: 5, kind: input, shape index: {}]   ;;  %s1177_s6 = inlined_call_operand.hbm [shape: f32[2,8,256], index: 6, kind: output, shape index: {}]  }
   0x1   :  { %v661_v0 = vld [vmem:[%s1172_s1 + $0x8] sm:$0xff]  ;;  %v31_v1 = vld [vmem:[%s1172_s1] sm:$0xff]  ;;  %701 = vset.pattern.permute.xlu1 %v742_v2  ;;  %700 = vset.pattern.permute.xlu0 %v742_v2 }
   0x2   :  { %348 = vperm.xlu1 %701, %v661_v0   ;;  %34 = vperm.xlu0 %700, %v31_v1  }
   0x3   :  { %12 = vsyncpa [#allocation4], 0  ;;  %v662_v3 = vld [vmem:[%s1173_s2 + $0x8] sm:$0xff]  ;;  %v50_v4 = vld [vmem:[%s1173_s2] sm:$0xff]  ;;  %333 = vmatprep.mubr.bf16.mxu0 %v742_v2  ;;  %619 = vmatprep.mubr.bf16.mxu1 %v742_v2  ;;  %v38_v6 = vlaneseq  ;;  %v71_v28 = vstv %s1171_s0  ;;  %s749_s12 = smov [#allocation3]  }
   0x4   :  { %v27_v5 = vld [vmem:[%s1175_s4] sm:$0xff]  ;;  %s638_s13 = sshll.u32 %s749_s12, 4  ;;  %s639_s13 = int_to_ptr.vmem [resolvable:$true] %s638_s13 }
   0x5   :  { %v39_v7 = vshrl.u32 %v38_v6, 7  ;;  %v28_v10 = vld [vmem:[%s1176_s5] ss:$2 sm:$0x3]  ;;  %p723_p1 = scmp.lt.s32.totalorder %s639_s13, %s639_s13 }
   0x6   :  { %357 = vperm.xlu1 %701, %v662_v3   ;;  %53 = vperm.xlu0 %700, %v50_v4   ;;  %v650_v11 = vld [vmem:[%s1176_s5 + $0x1] ss:$2 sm:$0x3] }
   0x7   :  { %v40_v8 = vsub.s32 0, %v39_v7  ;;  %v44_v9 = vsub.s32 1, %v39_v7  ;;  %v744_v7 = vmov 2475754826  }
   0x9   :  { %v41_v13 = vrot.slane %v28_v10, %v40_v8  ;;  %v45_v14 = vrot.slane %v28_v10, %v44_v9  ;;  %v60_v16 = vrot.slane %v650_v11, %v40_v8  ;;  %v64_v17 = vrot.slane %v650_v11, %v44_v9 }
   0xa   :  { %287 = vperm.xlu0 %700, %v27_v5   ;;  %v743_v5 = vmov 683565275   ;;  %v745_v11 = vmov 2131351028  }
  0x81   :  { %v349_v12 = vpop.permute.xlu1 %348  ;;  %v35_v15 = vpop.permute.xlu0 %34 }
  0x82   :  { %v351_v18 = vmul.f32 %v349_v12, %v41_v13  ;;  %v352_v19 = vmul.f32 %v349_v12, %v45_v14  ;;  %v48_v20 = vmul.f32 %v41_v13, %v35_v15  ;;  %v49_v21 = vmul.f32 %v45_v14, %v35_v15 }
  0x83   :  { %v746_v13 = vmov 2102212464  }
  0x85   :  { %v358_v22 = vpop.permute.xlu1 %357  ;;  %v54_v23 = vpop.permute.xlu0 %53 }
  0x86   :  { %v360_v24 = vmul.f32 %v358_v22, %v60_v16  ;;  %v361_v25 = vmul.f32 %v358_v22, %v64_v17  ;;  %v67_v26 = vmul.f32 %v60_v16, %v54_v23  ;;  %v68_v27 = vmul.f32 %v64_v17, %v54_v23 }
  0x87   :  { %v748_v22 = vmov 1326507024  }
  0x88   :  { %v362_v29 = vadd.f32 %v360_v24, %v351_v18  ;;  %v363_v30 = vadd.f32 %v361_v25, %v352_v19  ;;  %v69_v31 = vadd.f32 %v67_v26, %v48_v20  ;;  %v70_v32 = vadd.f32 %v68_v27, %v49_v21 }
  0x89   :  { %v747_v18 = vmov 920167782  }
  0x8a   :  { %v811_v33 = vadd.f32 %v362_v29, %v71_v28  ;;  %v813_v34 = vadd.f32 %v363_v30, %v71_v28  ;;  %v815_v35 = vadd.f32 %v71_v28, %v69_v31  ;;  %v817_v36 = vadd.f32 %v71_v28, %v70_v32 }
  0x8c   :  { %v369_v37 = vand.u32 2139095040, %v811_v33  ;;  %v473_v38 = vand.u32 2139095040, %v813_v34  ;;  %v77_v39 = vand.u32 2139095040, %v815_v35  ;;  %v181_v40 = vand.u32 2139095040, %v817_v36 }
  0x8d   :  { %v178_v41 = vand.u32 2147483647, %v817_v36  ;;  %v470_v54 = vand.u32 2147483647, %v813_v34  ;;  %v74_v62 = vand.u32 2147483647, %v815_v35 }
  0x8e   :  { %v474_v42 = vshrl.u32 %v473_v38, 23  ;;  %v78_v43 = vshrl.u32 %v77_v39, 23  ;;  %v182_v44 = vshrl.u32 %v181_v40, 23  ;;  %v370_v45 = vshrl.u32 %v369_v37, 23 }
  0x8f   :  { %v185_v49 = vand.u32 8388607, %v178_v41  ;;  %v833_v61 = vand.u32 8388607, %v470_v54  ;;  %vm959_vm15 = vcmp.le.f32.partialorder %v178_v41, 0.7853982 }
  0x90   :  { %v667_v46 = vadd.s32 4294967169, %v474_v42  ;;  %v651_v47 = vadd.s32 4294967169, %v78_v43  ;;  %v655_v48 = vadd.s32 4294967169, %v182_v44  ;;  %v663_v53 = vadd.s32 4294967169, %v370_v45 }
  0x91   :  { %v186_v55 = vor.u32 8388608, %v185_v49 }
  0x92   :  { %v480_v50 = vadd.s32 1, %v667_v46  ;;  %v84_v51 = vadd.s32 1, %v651_v47  ;;  %v188_v52 = vadd.s32 1, %v655_v48  ;;  %v829_v59 = vadd.s32 1, %v663_v53 }
  0x93   :  { %v840_v2 = vshll.u32 %v186_v55, 8 }
  0x94   :  { %vm481_vm0 = vcmp.gt.s32.totalorder %v480_v50, 0  ;;  %vm189_vm1 = vcmp.gt.s32.totalorder %v188_v52, 0  ;;  %vm85_vm2 = vcmp.gt.s32.totalorder %v84_v51, 0  ;;  %vm377_vm12 = vcmp.gt.s32.totalorder %v829_v59, 0 }
  0x95   :  { %v482_v56 = vsel %vm481_vm0, %v480_v50, 0  ;;  %v190_v57 = vsel %vm189_vm1, %v188_v52, 0  ;;  %v838_v0 = vsel %vm85_vm2, %v84_v51, 0  ;;  %vm180_vm0 = vcmp.lt.s32.totalorder %v817_v36, 0 }
  0x96   :  { %v827_v58 = vand.u32 31, %v482_v56  ;;  %v192_v60 = vand.u32 31, %v190_v57  ;;  %v836_v63 = vshrl.u32 %v482_v56, 5  ;;  %v191_v1 = vshrl.u32 %v190_v57, 5 }
  0x98   :  { %v843_v3 = vsub.s32 32, %v827_v58  ;;  %v193_v4 = vsub.s32 32, %v192_v60  ;;  %v487_v6 = vshll.u32 %v743_v5, %v827_v58  ;;  %v490_v8 = vshll.u32 %v744_v7, %v827_v58 }
  0x99   :  { %v195_v9 = vshll.u32 %v743_v5, %v192_v60  ;;  %v198_v10 = vshll.u32 %v744_v7, %v192_v60  ;;  %v201_v12 = vshll.u32 %v745_v11, %v192_v60  ;;  %v204_v14 = vshll.u32 %v746_v13, %v192_v60 }
  0x9a   :  { %v196_v15 = vshrl.u32 %v744_v7, %v193_v4  ;;  %v199_v16 = vshrl.u32 %v745_v11, %v193_v4  ;;  %v202_v17 = vshrl.u32 %v746_v13, %v193_v4  ;;  %v207_v19 = vshll.u32 %v747_v18, %v192_v60 }
  0x9b   :  { %v194_v20 = vshrl.u32 %v743_v5, %v193_v4  ;;  %v205_v21 = vshrl.u32 %v747_v18, %v193_v4  ;;  %v208_v23 = vshrl.u32 %v748_v22, %v193_v4  ;;  %vm210_vm3 = vcmp.lt.s32.totalorder %v191_v1, 1 }
  0x9c   :  { %v197_v24 = vor.u32 %v196_v15, %v195_v9  ;;  %v200_v25 = vor.u32 %v199_v16, %v198_v10  ;;  %v203_v26 = vor.u32 %v202_v17, %v201_v12  ;;  %vm212_vm4 = vcmp.lt.s32.totalorder %v191_v1, 3 }
  0x9d   :  { %v206_v27 = vor.u32 %v205_v21, %v204_v14  ;;  %v209_v28 = vor.u32 %v208_v23, %v207_v19  ;;  %vm213_vm5 = vcmp.lt.s32.totalorder %v191_v1, 4  ;;  %v488_v29 = vshrl.u32 %v744_v7, %v843_v3 }
  0x9e   :  { %v214_v30 = vsel %vm210_vm3, %v194_v20, %v197_v24  ;;  %v215_v31 = vsel %vm213_vm5, %v203_v26, 2102212464  ;;  %v218_v32 = vsel %vm210_vm3, %v197_v24, %v200_v25  ;;  %v222_v37 = vsel %vm210_vm3, %v200_v25, %v203_v26 }
  0x9f   :  { %vm211_vm6 = vcmp.lt.s32.totalorder %v191_v1, 2  ;;  %v216_v38 = vsel %vm212_vm4, %v200_v25, %v215_v31  ;;  %v219_v39 = vsel %vm213_vm5, %v206_v27, 920167782  ;;  %v223_v40 = vsel %vm213_vm5, %v209_v28, 1326507024 }
  0xa0   :  { %v220_v42 = vsel %vm212_vm4, %v203_v26, %v219_v39  ;;  %v224_v43 = vsel %vm212_vm4, %v206_v27, %v223_v40  ;;  %v489_v44 = vor.u32 %v488_v29, %v487_v6  ;;  %v491_v45 = vshrl.u32 %v745_v11, %v843_v3 }
  0xa1   :  { %v217_v46 = vsel %vm211_vm6, %v214_v30, %v216_v38  ;;  %v221_v47 = vsel %vm211_vm6, %v218_v32, %v220_v42  ;;  %v225_v48 = vsel %vm211_vm6, %v222_v37, %v224_v43  ;;  %v493_v49 = vshll.u32 %v745_v11, %v827_v58 }
  0xa2   :  { %v867_v50 = vmul.u32.u64.low %v840_v2, %v225_v48  ;;  %v868_v51 = vmul.u32.u64.high %v840_v2, %v225_v48, %v867_v50  ;;  %v871_v52 = vmul.u32.u64.low %v840_v2, %v221_v47  ;;  %v872_v53 = vmul.u32.u64.high %v840_v2, %v221_v47, %v871_v52 }
  0xa3   :  { %v492_v55 = vor.u32 %v491_v45, %v490_v8  ;;  %v494_v56 = vshrl.u32 %v746_v13, %v843_v3  ;;  %v496_v57 = vshll.u32 %v746_v13, %v827_v58  ;;  %v497_v60 = vshrl.u32 %v747_v18, %v843_v3 }
  0xa4   :  { %v88_v1 = vand.u32 31, %v838_v0  ;;  %v478_v4 = vor.u32 8388608, %v833_v61  ;;  %v499_v6 = vshll.u32 %v747_v18, %v827_v58  ;;  %v500_v9 = vshrl.u32 %v748_v22, %v843_v3 }
  0xa5   :  { %v233_v8 = vmul.u32 %v840_v2, %v217_v46  ;;  %v495_v10 = vor.u32 %v494_v56, %v493_v49  ;;  %v498_v12 = vor.u32 %v497_v60, %v496_v57  ;;  %vm502_vm7 = vcmp.lt.s32.totalorder %v836_v63, 1 }
  0xa6   :  { %vm235_vm8 = vc.u32 %v868_v51, %v871_v52  ;;  %v236_v14 = vadd.s32 1, %v872_v53  ;;  %v501_v15 = vor.u32 %v500_v9, %v499_v6  ;;  %vm505_vm9 = vcmp.lt.s32.totalorder %v836_v63, 4 }
  0xa7   :  { %vm503_vm10 = vcmp.lt.s32.totalorder %v836_v63, 2  ;;  %vm504_vm11 = vcmp.lt.s32.totalorder %v836_v63, 3  ;;  %v510_v58 = vsel %vm502_vm7, %v489_v44, %v492_v55  ;;  %v511_v61 = vsel %vm505_vm9, %v498_v12, 920167782 }
  0xa8   :  { %v237_v2 = vsel %vm235_vm8, %v236_v14, %v872_v53  ;;  %v507_v16 = vsel %vm505_vm9, %v495_v10, 2102212464  ;;  %v512_v17 = vsel %vm504_vm11, %v495_v10, %v511_v61  ;;  %v514_v19 = vsel %vm502_vm7, %v492_v55, %v495_v10 }
  0xa9   :  { %v238_v20 = vadd.s32 %v237_v2, %v233_v8  ;;  %v486_v21 = vshrl.u32 %v743_v5, %v843_v3  ;;  %v513_v23 = vsel %vm503_vm10, %v510_v58, %v512_v17  ;;  %v515_v24 = vsel %vm505_vm9, %v501_v15, 1326507024 }
  0xaa   :  { %v907_v25 = vsub.s32 32, %v88_v1  ;;  %v516_v26 = vsel %vm504_vm11, %v498_v12, %v515_v24  ;;  %v518_v27 = vshll.u32 %v478_v4, 8  ;;  %v508_v30 = vsel %vm504_vm11, %v492_v55, %v507_v16 }
  0xab   :  { %v239_v28 = vadd.s32 536870912, %v238_v20  ;;  %v506_v29 = vsel %vm502_vm7, %v486_v21, %v489_v44  ;;  %v517_v3 = vsel %vm503_vm10, %v514_v19, %v516_v26  ;;  %v925_v40 = vsel %vm377_vm12, %v829_v59, 0 }
  0xac   :  { %v917_v31 = vmul.u32.u64.low %v518_v27, %v517_v3  ;;  %v918_v32 = vmul.u32.u64.high %v518_v27, %v517_v3, %v917_v31  ;;  %v920_v37 = vmul.u32.u64.low %v518_v27, %v513_v23  ;;  %v921_v38 = vmul.u32.u64.high %v518_v27, %v513_v23, %v920_v37 }
  0xad   :  { %v240_v39 = vshrl.u32 %v239_v28, 30  ;;  %v928_v42 = vshrl.u32 %v838_v0, 5  ;;  %v509_v43 = vsel %vm503_vm10, %v506_v29, %v508_v30  ;;  %v81_v44 = vand.u32 8388607, %v74_v62 }
  0xae   :  { %v92_v46 = vshrl.u32 %v744_v7, %v907_v25  ;;  %v95_v47 = vshrl.u32 %v745_v11, %v907_v25  ;;  %v101_v59 = vshrl.u32 %v747_v18, %v907_v25  ;;  %vm527_vm13 = vc.u32 %v918_v32, %v920_v37 }
  0xaf   :  { %v241_v45 = vshll.u32 %v240_v39, 30  ;;  %v528_v0 = vadd.s32 1, %v921_v38  ;;  %v98_v63 = vshrl.u32 %v746_v13, %v907_v25  ;;  %v100_v48 = vshll.u32 %v746_v13, %v88_v1 }
  0xb0   :  { %v525_v50 = vmul.u32 %v518_v27, %v509_v43  ;;  %v94_v53 = vshll.u32 %v744_v7, %v88_v1  ;;  %v97_v55 = vshll.u32 %v745_v11, %v88_v1  ;;  %v103_v60 = vshll.u32 %v747_v18, %v88_v1 }
  0xb1   :  { %v242_v49 = vsub.s32 %v238_v20, %v241_v45  ;;  %v529_v56 = vsel %vm527_vm13, %v528_v0, %v921_v38  ;;  %v102_v57 = vor.u32 %v101_v59, %v100_v48  ;;  %v104_v4 = vshrl.u32 %v748_v22, %v907_v25 }
  0xb2   :  { %v264_v9 = vsub.s32 4, %v240_v39  ;;  %v530_v8 = vadd.s32 %v529_v56, %v525_v50  ;;  %v91_v10 = vshll.u32 %v743_v5, %v88_v1  ;;  %v96_v12 = vor.u32 %v95_v47, %v94_v53 }
  0xb3   :  { %v244_v6 = vsub.s32 0, %v242_v49  ;;  %v99_v14 = vor.u32 %v98_v63, %v97_v55  ;;  %v105_v15 = vor.u32 %v104_v4, %v103_v60  ;;  %vm109_vm14 = vcmp.lt.s32.totalorder %v928_v42, 4 }
  0xb4   :  { %v531_v61 = vadd.s32 536870912, %v530_v8  ;;  %v93_v2 = vor.u32 %v92_v46, %v91_v10  ;;  %v955_v16 = vand.u32 31, %v925_v40  ;;  %v115_v1 = vsel %vm109_vm14, %v102_v57, 920167782 }
  0xb5   :  { %v656_v58 = vmin.u32 %v244_v6, %v242_v49  ;;  %v265_v20 = vsel %vm180_vm0, %v264_v9, %v240_v39  ;;  %v82_v21 = vor.u32 8388608, %v81_v44  ;;  %vm106_vm1 = vcmp.lt.s32.totalorder %v928_v42, 1 }
  0xb6   :  { %v969_v23 = vshrl.u32 %v531_v61, 30  ;;  %vm108_vm2 = vcmp.lt.s32.totalorder %v928_v42, 3  ;;  %v118_v41 = vsel %vm106_vm1, %v96_v12, %v99_v14  ;;  %v119_v24 = vsel %vm109_vm14, %v105_v15, 1326507024 }
  0xb7   :  { %v246_v19 = vclz %v656_v58  ;;  %v114_v27 = vsel %vm106_vm1, %v93_v2, %v96_v12  ;;  %v116_v28 = vsel %vm108_vm2, %v99_v14, %v115_v1  ;;  %v120_v29 = vsel %vm108_vm2, %v102_v57, %v119_v24 }
  0xb8   :  { %v234_v30 = vadd.s32 %v871_v52, %v868_v51  ;;  %v533_v3 = vshll.u32 %v969_v23, 30  ;;  %vm107_vm3 = vcmp.lt.s32.totalorder %v928_v42, 2  ;;  %v111_v31 = vsel %vm109_vm14, %v99_v14, 2102212464 }
  0xb9   :  { %v657_v26 = vadd.s32 4294967294, %v246_v19  ;;  %v267_v38 = vsel %vm959_vm15, 0, %v265_v20  ;;  %v90_v39 = vshrl.u32 %v743_v5, %v907_v25  ;;  %v121_v43 = vsel %vm107_vm3, %v118_v41, %v120_v29 }
  0xba   :  { %v994_v45 = vsub.s32 %v530_v8, %v533_v3  ;;  %v117_v51 = vsel %vm107_vm3, %v114_v27, %v116_v28  ;;  %v122_v52 = vshll.u32 %v82_v21, 8  ;;  %v112_v0 = vsel %vm108_vm2, %v96_v12, %v111_v31 }
  0xbb   :  { %vm658_vm4 = vcmp.lt.s32.totalorder %v657_v26, 0  ;;  %v110_v59 = vsel %vm106_vm1, %v90_v39, %v93_v2  ;;  %v271_v60 = vadd.s32 3, %v267_v38  ;;  %v1012_v6 = vsub.s32 32, %v955_v16 }
  0xbc   :  { %v249_v44 = vsel %vm658_vm4, 0, %v657_v26  ;;  %v536_v25 = vsub.s32 0, %v994_v45  ;;  %v1003_v48 = vmul.u32.u64.low %v122_v52, %v121_v43  ;;  %v1004_v50 = vmul.u32.u64.high %v122_v52, %v121_v43, %v1003_v48 }
  0xbd   :  { %v250_v46 = vsub.s32 32, %v249_v44  ;;  %v254_v47 = vsub.s32 4294967266, %v249_v44  ;;  %v251_v63 = vshll.u32 %v242_v49, %v249_v44  ;;  %v113_v10 = vsel %vm107_vm3, %v110_v59, %v112_v0 }
  0xbe   :  { %v1006_v56 = vmul.u32.u64.low %v122_v52, %v117_v51  ;;  %v1007_v57 = vmul.u32.u64.high %v122_v52, %v117_v51, %v1006_v56  ;;  %v668_v4 = vmin.u32 %v536_v25, %v994_v45  ;;  %v366_v12 = vand.u32 2147483647, %v811_v33 }
  0xbf   :  { %v252_v53 = vshrl.u32 %v234_v30, %v250_v46  ;;  %v255_v55 = vadd.s32 127, %v254_v47  ;;  %v1018_v14 = vshrl.u32 %v925_v40, 5  ;;  %v526_v58 = vadd.s32 %v920_v37, %v918_v32 }
  0xc0   :  { %v538_v49 = vclz %v668_v4  ;;  %vm131_vm5 = vc.u32 %v1004_v50, %v1006_v56  ;;  %v1024_v61 = vand.u32 3, %v271_v60  ;;  %v556_v1 = vsub.s32 4, %v969_v23 }
  0xc1   :  { %v253_v9 = vor.u32 %v252_v53, %v251_v63  ;;  %v256_v8 = vshll.u32 %v255_v55, 23  ;;  %v132_v42 = vadd.s32 1, %v1007_v57  ;;  %vm472_vm6 = vcmp.lt.s32.totalorder %v813_v34, 0 }
  0xc2   :  { %v669_v2 = vadd.s32 4294967294, %v538_v49  ;;  %v129_v40 = vmul.u32 %v122_v52, %v113_v10  ;;  %v384_v21 = vshrl.u32 %v744_v7, %v1012_v6  ;;  %v373_v37 = vand.u32 8388607, %v366_v12 }
  0xc3   :  { %v257_v15 = vor.u32 4788187, %v256_v8  ;;  %v260_v20 = vcvt.s32.f32 %v253_v9  ;;  %v133_v32 = vsel %vm131_vm5, %v132_v42, %v1007_v57  ;;  %v383_v41 = vshll.u32 %v743_v5, %v955_v16 }
  0xc4   :  { %vm670_vm7 = vcmp.lt.s32.totalorder %v669_v2, 0  ;;  %v134_v27 = vadd.s32 %v133_v32, %v129_v40  ;;  %v386_v28 = vshll.u32 %v744_v7, %v955_v16  ;;  %v387_v3 = vshrl.u32 %v745_v11, %v1012_v6 }
  0xc5   :  { %v258_v19 = vand.u32 2147483647, %v257_v15  ;;  %v541_v26 = vsel %vm670_vm7, 0, %v669_v2  ;;  %v389_v31 = vshll.u32 %v745_v11, %v955_v16  ;;  %v385_v43 = vor.u32 %v384_v21, %v383_v41 }
  0xc6   :  { %v542_v29 = vsub.s32 32, %v541_v26  ;;  %v546_v30 = vsub.s32 4294967266, %v541_v26  ;;  %v135_v39 = vadd.s32 536870912, %v134_v27  ;;  %v393_v44 = vshrl.u32 %v747_v18, %v1012_v6 }
  0xc7   :  { %v261_v24 = vmul.f32 %v260_v20, %v258_v19  ;;  %v543_v51 = vshll.u32 %v994_v45, %v541_v26  ;;  %v390_v7 = vshrl.u32 %v746_v13, %v1012_v6  ;;  %v392_v11 = vshll.u32 %v746_v13, %v955_v16 }
  0xc8   :  { %v544_v52 = vshrl.u32 %v526_v58, %v542_v29  ;;  %v547_v46 = vadd.s32 127, %v546_v30  ;;  %v1049_v59 = vshrl.u32 %v135_v39, 30  ;;  %v396_v0 = vshrl.u32 %v748_v22, %v1012_v6 }
  0xc9   :  { %v262_v38 = vxor.u32 2147483648, %v261_v24  ;;  %vm1060_vm8 = vcmp.le.f32.partialorder %v470_v54, 0.7853982  ;;  %v388_v53 = vor.u32 %v387_v3, %v386_v28  ;;  %v394_v13 = vor.u32 %v393_v44, %v392_v11 }
  0xca   :  { %v545_v25 = vor.u32 %v544_v52, %v543_v51  ;;  %v548_v48 = vshll.u32 %v547_v46, 23  ;;  %v137_v55 = vshll.u32 %v1049_v59, 30  ;;  %v395_v22 = vshll.u32 %v747_v18, %v955_v16 }
  0xcb   :  { %v263_v47 = vsel %vm180_vm0, %v262_v38, %v261_v24  ;;  %v557_v17 = vsel %vm472_vm6, %v556_v1, %v969_v23  ;;  %v391_v54 = vor.u32 %v390_v7, %v389_v31  ;;  %v374_v4 = vor.u32 8388608, %v373_v37 }
  0xcc   :  { %v266_v45 = vsel %vm959_vm15, %v817_v36, %v263_v47  ;;  %v549_v57 = vor.u32 4788187, %v548_v48  ;;  %v1070_v60 = vsub.s32 %v134_v27, %v137_v55  ;;  %v397_v9 = vor.u32 %v396_v0, %v395_v22 }
  0xcd   :  { %702 = vcosq.f32 %v266_v45  ;;  %vm398_vm9 = vcmp.lt.s32.totalorder %v1018_v14, 1  ;;  %v552_v49 = vcvt.s32.f32 %v545_v25  ;;  %vm401_vm10 = vcmp.lt.s32.totalorder %v1018_v14, 4 }
  0xce   :  { %704 = vsinq.f32 %v266_v45  ;;  %v550_v8 = vand.u32 2147483647, %v549_v57  ;;  %v406_v18 = vsel %vm398_vm9, %v385_v43, %v388_v53  ;;  %v140_v16 = vsub.s32 0, %v1070_v60 }
  0xcf   :  { %v382_v10 = vshrl.u32 %v743_v5, %v1012_v6  ;;  %vm400_vm11 = vcmp.lt.s32.totalorder %v1018_v14, 3  ;;  %v407_v23 = vsel %vm401_vm10, %v394_v13, 920167782  ;;  %vm399_vm12 = vcmp.lt.s32.totalorder %v1018_v14, 2 }
  0xd0   :  { %v553_v15 = vmul.f32 %v552_v49, %v550_v8  ;;  %v403_v58 = vsel %vm401_vm10, %v391_v54, 2102212464  ;;  %v408_v2 = vsel %vm400_vm11, %v391_v54, %v407_v23  ;;  %v652_v1 = vmin.u32 %v140_v16, %v1070_v60 }
  0xd1   :  { %v409_v42 = vsel %vm399_vm12, %v406_v18, %v408_v2  ;;  %v410_v19 = vsel %vm398_vm9, %v388_v53, %v391_v54  ;;  %v411_v20 = vsel %vm401_vm10, %v397_v9, 1326507024  ;;  %vm270_vm13 = vweird.f32 %v817_v36 }
  0xd2   :  { %vm273_vm14 = vcmp.lt.s32.totalorder %v1024_v61, 2  ;;  %v554_v5 = vxor.u32 2147483648, %v553_v15  ;;  %v412_v6 = vsel %vm400_vm11, %v394_v13, %v411_v20  ;;  %v414_v40 = vshll.u32 %v374_v4, 8 }
  0xd3   :  { %vm294_vm15 = vcmask 1043456   ;;  %v559_v21 = vsel %vm1060_vm8, 0, %v557_v17  ;;  %v142_v32 = vclz %v652_v1  ;;  %v402_v37 = vsel %vm398_vm9, %v382_v10, %v385_v43 }
  0xd4   :  { %v404_v41 = vsel %vm400_vm11, %v388_v53, %v403_v58  ;;  %v555_v24 = vsel %vm472_vm6, %v554_v5, %v553_v15  ;;  %v413_v26 = vsel %vm399_vm12, %v410_v19, %v412_v6  ;;  %vm274_vm0 = vcmp.eq.s32.totalorder %v1024_v61, 0 }
  0xd5   :  { %v1102_v27 = vmul.u32.u64.low %v414_v40, %v409_v42  ;;  %v1103_v28 = vmul.u32.u64.high %v414_v40, %v409_v42, %v1102_v27  ;;  %v558_v30 = vsel %vm1060_vm8, %v813_v34, %v555_v24  ;;  %v653_v3 = vadd.s32 4294967294, %v142_v32 }
  0xd6   :  { %v1109_v31 = vmul.u32.u64.low %v414_v40, %v413_v26  ;;  %v1110_v38 = vmul.u32.u64.high %v414_v40, %v413_v26, %v1109_v31  ;;  %vm277_vm1 = vcmp.eq.s32.totalorder %v1024_v61, 2  ;;  %706 = vcosq.f32 %v558_v30 }
  0xd7   :  { %v703_v29 = vpop.eup %702  ;;  %708 = vsinq.f32 %v558_v30  ;;  %vm654_vm2 = vcmp.lt.s32.totalorder %v653_v3, 0  ;;  %v405_v51 = vsel %vm399_vm12, %v402_v37, %v404_v41  ;;  %v563_v46 = vadd.s32 3, %v559_v21 }
  0xd8   :  { %v705_v39 = vpop.eup %704  ;;  %v278_v43 = vxor.u32 2147483648, %v703_v29  ;;  %v145_v7 = vsel %vm654_vm2, 0, %v653_v3  ;;  %v424_v47 = vadd.s32 1, %v1103_v28  ;;  %v130_v0 = vadd.s32 %v1006_v56, %v1004_v50 }
  0xd9   :  { %v275_v44 = vxor.u32 2147483648, %v705_v39  ;;  %v146_v45 = vsub.s32 32, %v145_v7  ;;  %v150_v63 = vsub.s32 4294967266, %v145_v7  ;;  %v147_v48 = vshll.u32 %v1070_v60, %v145_v7 }
  0xda   :  { %v279_v52 = vsel %vm277_vm1, %v278_v43, %v705_v39  ;;  %v421_v53 = vmul.u32 %v414_v40, %v405_v51  ;;  %vm423_vm3 = vc.u32 %v1110_v38, %v1102_v27  ;;  %v564_v61 = vand.u32 3, %v563_v46 }
  0xdb   :  { %v276_v11 = vsel %vm274_vm0, %v703_v29, %v275_v44  ;;  %v148_v55 = vshrl.u32 %v130_v0, %v146_v45  ;;  %v151_v13 = vadd.s32 127, %v150_v63  ;;  %v425_v22 = vsel %vm423_vm3, %v424_v47, %v1103_v28 }
  0xdc   :  { %v280_v25 = vsel %vm273_vm14, %v276_v11, %v279_v52  ;;  %v426_v50 = vadd.s32 %v425_v22, %v421_v53  ;;  %vm569_vm4 = vcmp.eq.s32.totalorder %v564_v61, 2  ;;  %vm566_vm5 = vcmp.eq.s32.totalorder %v564_v61, 0 }
  0xdd   :  { %v281_v14 = vsel %vm270_vm13, nan, %v280_v25  ;;  %v149_v56 = vor.u32 %v148_v55, %v147_v48  ;;  %v152_v17 = vshll.u32 %v151_v13, 23  ;;  %v160_v58 = vsub.s32 4, %v1049_v59  ;;  %v284_v13 = vld [vmem:[%s1174_s3] sm:$0xf] }
  0xde   :  { %v283_v57 = vpack.c.bf16 %v281_v14, %v281_v14  ;;  %v427_v54 = vadd.s32 536870912, %v426_v50  ;;  %vm565_vm6 = vcmp.lt.s32.totalorder %v564_v61, 2  ;;  %vm562_vm7 = vweird.f32 %v813_v34 }
  0xdf   :  { %v153_v60 = vor.u32 4788187, %v152_v17  ;;  %v156_v18 = vcvt.s32.f32 %v149_v56  ;;  %vm76_vm8 = vcmp.lt.s32.totalorder %v815_v35, 0  ;;  %vm75_vm9 = vcmp.le.f32.partialorder %v74_v62, 0.7853982 }
  0xe0   :  { %659 = vmatprep.subr.msk.bf16.mxu0 %vm294_vm15, %v283_v57  ;;  %v707_v4 = vpop.eup %706  ;;  %v1128_v9 = vshrl.u32 %v427_v54, 30  ;;  %v161_v21 = vsel %vm76_vm8, %v160_v58, %v1049_v59  ;;  %v422_v29 = vadd.s32 %v1102_v27, %v1110_v38  ;;  %vm166_vm14 = vweird.f32 %v815_v35 }
  0xe1   :  { %v709_v8 = vpop.eup %708  ;;  %v570_v49 = vxor.u32 2147483648, %v707_v4  ;;  %v154_v36 = vand.u32 2147483647, %v153_v60  ;;  %v163_v34 = vsel %vm75_vm9, 0, %v161_v21  ;;  %vm368_vm0 = vcmp.lt.s32.totalorder %v811_v33, 0 }
  0xe2   :  { %v567_v16 = vxor.u32 2147483648, %v709_v8  ;;  %v429_v10 = vshll.u32 %v1128_v9, 30  ;;  %v167_v26 = vadd.s32 3, %v163_v34  ;;  %v452_v53 = vsub.s32 4, %v1128_v9 }
  0xe3   :  { %v571_v23 = vsel %vm569_vm4, %v570_v49, %v709_v8  ;;  %v157_v15 = vmul.f32 %v156_v18, %v154_v36  ;;  %vm290_vm1 = vcmask 64512   ;;  %vm367_vm2 = vcmp.le.f32.partialorder %v366_v12, 0.7853982 }
  0xe4   :  { %v568_v2 = vsel %vm566_vm5, %v707_v4, %v567_v16  ;;  %v430_v1 = vsub.s32 %v426_v50, %v429_v10  ;;  %v168_v3 = vand.u32 3, %v167_v26  ;;  %v453_v22 = vsel %vm368_vm0, %v452_v53, %v1128_v9  ;;  %v671_v16 = vld [vmem:[%s1174_s3 + $0x4] sm:$0xf]  ;;  %v288_v10 = vpop.permute.xlu0 %287  ;;  %s718_s3 = scalar_lea.vmem %s639_s13, 512 }
  0xe5   :  { %v572_v42 = vsel %vm565_vm6, %v568_v2, %v571_v23  ;;  %v158_v19 = vxor.u32 2147483648, %v157_v15  ;;  %v455_v50 = vsel %vm367_vm2, 0, %v453_v22  ;;  %vm458_vm6 = vweird.f32 %v811_v33  ;;  %p719_p0 = scmp.ne.s32.totalorder %s639_s13, %s718_s3  ;;  %p724_p2 = scmp.lt.s32.totalorder %s718_s3, %s718_s3 }
  0xe6   :  { %v573_v20 = vsel %vm562_vm7, nan, %v572_v42  ;;  %v432_v5 = vsub.s32 0, %v430_v1  ;;  %vm173_vm11 = vcmp.eq.s32.totalorder %v168_v3, 2  ;;  %vm170_vm12 = vcmp.eq.s32.totalorder %v168_v3, 0 }
  0xe7   :  { %v575_v6 = vpack.c.bf16 %v573_v20, %v573_v20  ;;  %v159_v40 = vsel %vm76_vm8, %v158_v19, %v157_v15  ;;  %vm169_vm13 = vcmp.lt.s32.totalorder %v168_v3, 2  ;;  %v459_v56 = vadd.s32 3, %v455_v50  ;;  %p725_p3 = por %p724_p2, %p723_p1 }
  0xe8   :  { %v162_v32 = vsel %vm75_vm9, %v815_v35, %v159_v40  ;;  %v664_v37 = vmin.u32 %v432_v5, %v430_v1 }
  0xe9   :  { %672 = vmatprep.subr.msk.bf16.mxu1 %vm294_vm15, %v575_v6  ;;  %710 = vcosq.f32 %v162_v32  ;;  %v460_v17 = vand.u32 3, %v459_v56  ;;  %p726_p4 = pnand %p725_p3, %p719_p0 }
  0xea   :  { %712 = vsinq.f32 %v162_v32  ;;  %v434_v41 = vclz %v664_v37 }
  0xeb   :  { %vm465_vm3 = vcmp.eq.s32.totalorder %v460_v17, 2  ;;  %vm462_vm4 = vcmp.eq.s32.totalorder %v460_v17, 0  ;;  %vm461_vm5 = vcmp.lt.s32.totalorder %v460_v17, 2 }
  0xec   :  { %v665_v24 = vadd.s32 4294967294, %v434_v41 }
  0xee   :  { %vm666_vm10 = vcmp.lt.s32.totalorder %v665_v24, 0 }
  0xef   :  { %v437_v28 = vsel %vm666_vm10, 0, %v665_v24 }
  0xf0   :  { %v438_v62 = vsub.s32 32, %v437_v28  ;;  %v442_v30 = vsub.s32 4294967266, %v437_v28  ;;  %v439_v59 = vshll.u32 %v430_v1, %v437_v28 }
  0xf2   :  { %v440_v31 = vshrl.u32 %v422_v29, %v438_v62  ;;  %v443_v39 = vadd.s32 127, %v442_v30 }
  0xf3   :  { %v711_v43 = vpop.eup %710 }
  0xf4   :  { %v713_v44 = vpop.eup %712  ;;  %v174_v51 = vxor.u32 2147483648, %v711_v43  ;;  %v441_v52 = vor.u32 %v440_v31, %v439_v59  ;;  %v444_v46 = vshll.u32 %v443_v39, 23 }
  0xf5   :  { %v171_v7 = vxor.u32 2147483648, %v713_v44 }
  0xf6   :  { %v175_v47 = vsel %vm173_vm11, %v174_v51, %v713_v44  ;;  %v445_v11 = vor.u32 4788187, %v444_v46  ;;  %v448_v45 = vcvt.s32.f32 %v441_v52 }
  0xf7   :  { %v172_v0 = vsel %vm170_vm12, %v711_v43, %v171_v7 }
  0xf8   :  { %v176_v27 = vsel %vm169_vm13, %v172_v0, %v175_v47  ;;  %v446_v38 = vand.u32 2147483647, %v445_v11 }
  0xf9   :  { %v177_v63 = vsel %vm166_vm14, nan, %v176_v27 }
  0xfa   :  { %v282_v25 = vpack.c.bf16 %v177_v63, %v177_v63  ;;  %v449_v48 = vmul.f32 %v448_v45, %v446_v38 }
  0xfc   :  { %v296_v14 = vsel %vm294_vm15, %v282_v25, 0  ;;  %v450_v55 = vxor.u32 2147483648, %v449_v48 }
  0xfd   :  { %302 = vmatpush1.bf16.msra.mxu0 %v296_v14 }
  0xfe   :  { %v451_v35 = vsel %vm368_vm0, %v450_v55, %v449_v48 }
  0xff   :  { %v454_v57 = vsel %vm367_vm2, %v811_v33, %v451_v35 }
 0x100   :  { %714 = vcosq.f32 %v454_v57  ;;  %660 = vmatmul.mubr.msk.bf16.vlgmr.msra.gmra.mrb[0].mxu0 %vm290_vm1, %v284_v13 }
 0x101   :  { %716 = vsinq.f32 %v454_v57 }
 0x10a   :  { %v715_v61 = vpop.eup %714 }
 0x10b   :  { %v717_v54 = vpop.eup %716  ;;  %v466_v60 = vxor.u32 2147483648, %v715_v61 }
 0x10c   :  { %v463_v4 = vxor.u32 2147483648, %v717_v54 }
 0x10d   :  { %v467_v8 = vsel %vm465_vm3, %v466_v60, %v717_v54 }
 0x10e   :  { %v464_v12 = vsel %vm462_vm4, %v715_v61, %v463_v4 }
 0x10f   :  { %v468_v9 = vsel %vm461_vm5, %v464_v12, %v467_v8 }
 0x110   :  { %v469_v49 = vsel %vm458_vm6, nan, %v468_v9 }
 0x111   :  { %v574_v36 = vpack.c.bf16 %v469_v49, %v469_v49 }
 0x113   :  { %v582_v18 = vsel %vm294_vm15, %v574_v36, 0 }
 0x114   :  { %588 = vmatpush1.bf16.msra.mxu1 %v582_v18 }
 0x117   :  { %673 = vmatmul.mubr.msk.bf16.vlgmr.msra.gmra.mrb[0].mxu1 %vm290_vm1, %v671_v16 }
 0x1d3   :  { %v335_v23 = vpop.f32.mrb[0].mxu0 }
 0x1d4   :  { %v336_v15 = vadd.f32 %v335_v23, %v288_v10  ;;  %v337_v58 = vpop.f32.mrb[1].mxu0 }
 0x1d5   :  { %v338_v2 = vadd.f32 %v337_v58, %v288_v10  ;;  %v339_v1 = vpop.f32.mrb[2].mxu0 }
 0x1d6   :  { %342 = vst [vmem:[#allocation3] sm:$0xff] %v336_v15  ;;  %v340_v33 = vpop.f32.mrb[3].mxu0 }
 0x1d7   :  { %343 = vst [vmem:[#allocation3 + $0x8] sm:$0xff] %v338_v2 }
 0x1ea   :  { %v621_v42 = vpop.f32.mrb[0].mxu1 }
 0x1eb   :  { %v622_v19 = vadd.f32 %v621_v42, %v288_v10  ;;  %v623_v20 = vpop.f32.mrb[1].mxu1 }
 0x1ec   :  { %v624_v5 = vadd.f32 %v623_v20, %v288_v10  ;;  %v625_v6 = vpop.f32.mrb[2].mxu1 }
 0x1ed   :  { %631 = vst [vmem:[#allocation3 + $0x10] sm:$0xff] %v622_v19  ;;  %v626_v40 = vpop.f32.mrb[3].mxu1 }
 0x1ee   :  { %632 = vst [vmem:[#allocation3 + $0x18] sm:$0xff] %v624_v5 }
 0x1ef   :  { %729 = shalt.err (!%p726_p4)
}
 0x1f0   :  { %s730_s16 = scalar_lea.hbm %s1177_s6, 512 }
 0x1f1   :  { %p731_p5 = scmp.ne.s32.totalorder %s1177_s6, %s730_s16  ;;  %p734_p6 = scmp.lt.u32.totalorder %s730_s16, %s1177_s6 }
 0x1f3   :  { %p736_p7 = pnand %p734_p6, %p731_p5 }
 0x1f5   :  { %739 = shalt.err (!%p736_p7)
}
 0x1f6   :  { %s750_s21 = smov 256   ;;  %s751_s22 = smov 16  }
 0x1f7   :  { %644 = dma.vmem_to_hbm [thread:$0]  %s639_s13, 512, %s1177_s6, [#allocation4], %s750_s21, %s750_s21, %s751_s22  }
 0x1f8   :  { %740 = dma.done.wait [#allocation4], 512  }
 0x1f9   :  { %741 = vsyncadd [#allocation4], 4294966784 }
 0x1fa   :  { %648 = vsyncpa [#allocation4], 1 }

</bundles_post_ra>
